<compile_context>
chip_gen: v7x
topology: tpu7x:2x2x1
jax: 0.10.0
libtpu: 0.0.40
codegen_flags: <defaults>
</compile_context>

<pallas_src>
import functools

import jax
import jax.numpy as jnp
from jax import lax
from jax.experimental import pallas as pl
from jax.experimental.pallas import tpu as pltpu

_NEG = -1e30      # scatter-max identity / "no incoming edge" sentinel (ELU >= -1)
_LANE = 128
_SUB = 8


def _round_up(x, m):
    return (x + m - 1) // m * m


def _elu(x):
    # nn.ELU(alpha=1.0); exp argument clamped so the untaken branch never overflows.
    return jnp.where(x > 0.0, x, jnp.exp(jnp.minimum(x, 0.0)) - 1.0)


def _graph_layer_kernel(dst_smem, edge_ref, gi_ref, gj_ref, b1_ref, w2_ref,
                        b2_ref, out_ref, m_ref, *, n_edges):
    ei = pl.program_id(0)
    last = pl.num_programs(0) - 1

    e_t = edge_ref.shape[0]
    n_pad = gi_ref.shape[0]

    @pl.when(ei == 0)
    def _():
        out_ref[...] = jnp.full(out_ref.shape, _NEG, out_ref.dtype)

    src = edge_ref[:, 0:1]                                     # [E_t, 1]  (j)
    dst = edge_ref[:, 1:2]                                     # [E_t, 1]  (i)

    # --- gather the pre-folded first-layer activations via one-hot MXU matmuls ---
    # z1[e] = (h @ W1[:F])[dst[e]] + (h @ W1[F:])[src[e]] + b1
    iota_n = lax.broadcasted_iota(jnp.int32, (e_t, n_pad), 1)
    oh_i = (iota_n == dst).astype(jnp.float32)                 # [E_t, N_pad]
    oh_j = (iota_n == src).astype(jnp.float32)
    z1 = (jnp.dot(oh_i, gi_ref[...], preferred_element_type=jnp.float32)
          + jnp.dot(oh_j, gj_ref[...], preferred_element_type=jnp.float32)
          + b1_ref[...])
    a1 = _elu(z1)                                              # [E_t, H_pad]

    z2 = jnp.dot(a1, w2_ref[...], preferred_element_type=jnp.float32) + b2_ref[...]
    m_ref[...] = _elu(z2)                                      # [E_t, O_pad]

    # --- scatter-max: per-edge RMW into the resident accumulator, O(E_t * O_pad) ---
    e_base = ei * e_t
    n_valid = jnp.minimum(n_edges - e_base, e_t)               # padded edges skipped

    def body(e, carry):
        d = dst_smem[e_base + e]                               # scalar from SMEM
        row = m_ref[pl.ds(e, 1), :]                            # [1, O_pad]
        cur = out_ref[pl.ds(d, 1), :]
        out_ref[pl.ds(d, 1), :] = jnp.maximum(cur, row)
        return carry

    lax.fori_loop(0, n_valid, body, 0)

    @pl.when(ei == last)
    def _():
        acc = out_ref[...]
        # nodes with no incoming edge keep the scatter fill value of 0
        out_ref[...] = jnp.where(acc > 0.5 * _NEG, acc, 0.0)


def graph_layer(h, edge_index, w1, b1, w2, b2, *, edge_tile=256):
    # edge_tile: 256 is a good default on v6e/v7x; prefer 128 on v5e.
    N, F = h.shape
    assert w1.shape[0] == 2 * F
    H = w1.shape[1]
    O = w2.shape[1]
    E = int(edge_index.shape[1])

    f32 = jnp.float32
    H_pad = _round_up(H, _LANE)
    O_pad = _round_up(O, _LANE)
    N_pad = _round_up(N, _SUB)

    E_t = min(edge_tile, _round_up(max(E, 1), _SUB))
    E_pad = _round_up(max(E, 1), E_t)

    # --- pre-fold h into W1 (associativity): one XLA matmul per half, no h in VMEM ---
    h32 = h.astype(f32)
    w1_32 = w1.astype(f32)
    gi = h32 @ w1_32[:F]                                        # [N, H]  (for h_i = h[dst])
    gj = h32 @ w1_32[F:]                                        # [N, H]  (for h_j = h[src])
    gi_p = jnp.zeros((N_pad, H_pad), f32).at[:N, :H].set(gi)
    gj_p = jnp.zeros((N_pad, H_pad), f32).at[:N, :H].set(gj)
    b1_p = jnp.zeros((1, H_pad), f32).at[0, :H].set(b1.astype(f32))
    w2_p = jnp.zeros((H_pad, O_pad), f32).at[:H, :O].set(w2.astype(f32))
    b2_p = jnp.zeros((1, O_pad), f32).at[0, :O].set(b2.astype(f32))

    # edges as [E_pad, 2]: col 0 = src (j), col 1 = dst (i); padded edges are
    # (0, 0) but never scattered (loop bound = valid edge count per tile).
    edge_t = jnp.transpose(edge_index.astype(jnp.int32))        # [E, 2]
    edge_p = jnp.concatenate(
        [edge_t, jnp.zeros((E_pad - E, 2), jnp.int32)], axis=0)
    dst_all = edge_p[:, 1]                                      # [E_pad] -> SMEM

    grid = (E_pad // E_t,)
    kernel = functools.partial(_graph_layer_kernel, n_edges=E)

    out_p = pl.pallas_call(
        kernel,
        out_shape=jax.ShapeDtypeStruct((N_pad, O_pad), f32),
        grid_spec=pltpu.PrefetchScalarGridSpec(
            num_scalar_prefetch=1,                              # dst_all -> SMEM
            grid=grid,
            in_specs=[
                pl.BlockSpec((E_t, 2), lambda ei, dst: (ei, 0)),        # edge tile
                pl.BlockSpec((N_pad, H_pad), lambda ei, dst: (0, 0)),   # G_i
                pl.BlockSpec((N_pad, H_pad), lambda ei, dst: (0, 0)),   # G_j
                pl.BlockSpec((1, H_pad), lambda ei, dst: (0, 0)),       # b1
                pl.BlockSpec((H_pad, O_pad), lambda ei, dst: (0, 0)),   # W2
                pl.BlockSpec((1, O_pad), lambda ei, dst: (0, 0)),       # b2
            ],
            out_specs=pl.BlockSpec((N_pad, O_pad), lambda ei, dst: (0, 0)),
            scratch_shapes=[pltpu.VMEM((E_t, O_pad), f32)],             # messages m
        ),
        compiler_params=pltpu.CompilerParams(
            dimension_semantics=("arbitrary",),
            vmem_limit_bytes=32 * 1024 * 1024,
        ),
    )(dst_all, edge_p, gi_p, gj_p, b1_p, w2_p, b2_p)

    return out_p[:N, :O]


if __name__ == "__main__":
    key = jax.random.PRNGKey(0)
    N, F, H, O, E = 8, 16, 32, 16, 24   # nodes, in_feat, hidden_feat, out_feat, edges
    k1, k2, k3, k4, k5, k6, k7 = jax.random.split(key, 7)

    h = jax.random.normal(k1, (N, F), jnp.float32)
    src = jax.random.randint(k2, (E,), 0, N, dtype=jnp.int32)
    dst = jax.random.randint(k3, (E,), 0, N, dtype=jnp.int32)
    edge_index = jnp.stack([src, dst], axis=0).astype(jnp.int32)

    # deterministic init mimicking nn.Linear: U(-1/sqrt(fan_in), 1/sqrt(fan_in))
    lim1 = 1.0 / (2.0 * F) ** 0.5
    w1 = jax.random.uniform(k4, (2 * F, H), jnp.float32, -lim1, lim1)
    b1 = jax.random.uniform(k5, (H,), jnp.float32, -lim1, lim1)
    lim2 = 1.0 / float(H) ** 0.5
    w2 = jax.random.uniform(k6, (H, O), jnp.float32, -lim2, lim2)
    b2 = jax.random.uniform(k7, (O,), jnp.float32, -lim2, lim2)

    out = jax.block_until_ready(graph_layer(h, edge_index, w1, b1, w2, b2))

    # pure-JAX reference (same semantics as the PyTorch module)
    def ref(h, edge_index, w1, b1, w2, b2):
        h_j = h[edge_index[0]]
        h_i = h[edge_index[1]]
        m = jnp.concatenate([h_i, h_j], axis=-1)
        m = jax.nn.elu(m @ w1 + b1)
        m = jax.nn.elu(m @ w2 + b2)
        idx = edge_index[1]
        o = jnp.full((N, O), -jnp.inf, jnp.float32).at[idx].max(m)
        cnt = jnp.zeros((N,), jnp.float32).at[idx].add(1.0)
        return jnp.where(cnt[:, None] > 0, o, 0.0)

    ref_out = ref(h, edge_index, w1, b1, w2, b2)
    assert jnp.allclose(out, ref_out, atol=2e-5, rtol=2e-5), (
        float(jnp.max(jnp.abs(out - ref_out))))
    print("KERNEL_OK")
</pallas_src>

<mosaic_0001>
module attributes {stable_mosaic.version = 11 : i64} {
  func.func @_graph_layer_kernel(%arg0: i32, %arg1: memref<24xi32, #tpu.memory_space<smem>>, %arg2: memref<24x2xi32, #tpu.memory_space<vmem>>, %arg3: memref<8x128xf32, #tpu.memory_space<vmem>>, %arg4: memref<8x128xf32, #tpu.memory_space<vmem>>, %arg5: memref<1x128xf32, #tpu.memory_space<vmem>>, %arg6: memref<128x128xf32, #tpu.memory_space<vmem>>, %arg7: memref<1x128xf32, #tpu.memory_space<vmem>>, %arg8: memref<8x128xf32, #tpu.memory_space<vmem>>, %arg9: memref<24x128xf32, #tpu.memory_space<vmem>>) attributes {dimension_semantics = [#tpu.dimension_semantics<arbitrary>], iteration_bounds = array<i64: 1>, scalar_prefetch = 1 : i64, scratch_operands = 1 : i64, tpu.core_type = #tpu.core_type<tc>, window_params = [{transform_indices = @transform_0, window_bounds = array<i64: 24, 2>}, {pipeline_mode = #tpu.pipeline_mode<synchronous>, transform_indices = @transform_1, window_bounds = array<i64: 8, 128>}, {pipeline_mode = #tpu.pipeline_mode<synchronous>, transform_indices = @transform_2, window_bounds = array<i64: 8, 128>}, {pipeline_mode = #tpu.pipeline_mode<synchronous>, transform_indices = @transform_3, window_bounds = array<i64: 1, 128>}, {pipeline_mode = #tpu.pipeline_mode<synchronous>, transform_indices = @transform_4, window_bounds = array<i64: 128, 128>}, {pipeline_mode = #tpu.pipeline_mode<synchronous>, transform_indices = @transform_5, window_bounds = array<i64: 1, 128>}, {pipeline_mode = #tpu.pipeline_mode<synchronous>, transform_indices = @transform_6, window_bounds = array<i64: 8, 128>}]} {
    %c0_i32 = arith.constant 0 : i32
    %0 = arith.cmpi eq, %arg0, %c0_i32 : i32
    %1 = arith.extui %0 : i1 to i32
    %c0_i32_0 = arith.constant 0 : i32
    %2 = arith.cmpi ne, %1, %c0_i32_0 : i32
    scf.if %2 {
      %cst_29 = arith.constant -1.000000e+30 : f32
      %52 = vector.broadcast %cst_29 : f32 to vector<8x128xf32>
      %c0_30 = arith.constant 0 : index
      %c0_31 = arith.constant 0 : index
      %53 = vector.load %arg8[%c0_30, %c0_31] : memref<8x128xf32, #tpu.memory_space<vmem>>, vector<8x128xf32>
      tpu.vector_store %arg8[%c0_30, %c0_31], %52 {strides = array<i32>} : memref<8x128xf32, #tpu.memory_space<vmem>>, vector<8x128xf32>,
    } else {
    }
    %c0 = arith.constant 0 : index
    %c0_1 = arith.constant 0 : index
    %3 = vector.load %arg2[%c0, %c0_1] : memref<24x2xi32, #tpu.memory_space<vmem>>, vector<24x1xi32>
    %c0_2 = arith.constant 0 : index
    %c1 = arith.constant 1 : index
    %4 = vector.load %arg2[%c0_2, %c1] : memref<24x2xi32, #tpu.memory_space<vmem>>, vector<24x1xi32>
    %5 = tpu.iota {dimensions = array<i32: 1>} : vector<24x8xi32>
    %6 = vector.broadcast %4 : vector<24x1xi32> to vector<24x8xi32>
    %7 = arith.cmpi eq, %5, %6 : vector<24x8xi32>
    %8 = arith.extui %7 : vector<24x8xi1> to vector<24x8xi32>
    %9 = arith.sitofp %8 : vector<24x8xi32> to vector<24x8xf32>
    %10 = vector.broadcast %3 : vector<24x1xi32> to vector<24x8xi32>
    %11 = arith.cmpi eq, %5, %10 : vector<24x8xi32>
    %12 = arith.extui %11 : vector<24x8xi1> to vector<24x8xi32>
    %13 = arith.sitofp %12 : vector<24x8xi32> to vector<24x8xf32>
    %c0_3 = arith.constant 0 : index
    %c0_4 = arith.constant 0 : index
    %14 = vector.load %arg3[%c0_3, %c0_4] : memref<8x128xf32, #tpu.memory_space<vmem>>, vector<8x128xf32>
    %cst = arith.constant dense<0.000000e+00> : vector<24x128xf32>
    %15 = tpu.matmul %9, %14, %cst {dimension_numbers = #tpu.dot_dimension_numbers<[1], [0], [0], [1], [0, 0, 1, 1], [], []>} : vector<24x8xf32>, vector<8x128xf32>, vector<24x128xf32> -> vector<24x128xf32>
    %c0_5 = arith.constant 0 : index
    %c0_6 = arith.constant 0 : index
    %16 = vector.load %arg4[%c0_5, %c0_6] : memref<8x128xf32, #tpu.memory_space<vmem>>, vector<8x128xf32>
    %cst_7 = arith.constant dense<0.000000e+00> : vector<24x128xf32>
    %17 = tpu.matmul %13, %16, %cst_7 {dimension_numbers = #tpu.dot_dimension_numbers<[1], [0], [0], [1], [0, 0, 1, 1], [], []>} : vector<24x8xf32>, vector<8x128xf32>, vector<24x128xf32> -> vector<24x128xf32>
    %18 = arith.addf %15, %17 : vector<24x128xf32>
    %c0_8 = arith.constant 0 : index
    %c0_9 = arith.constant 0 : index
    %19 = vector.load %arg5[%c0_8, %c0_9] : memref<1x128xf32, #tpu.memory_space<vmem>>, vector<1x128xf32>
    %20 = vector.broadcast %19 : vector<1x128xf32> to vector<24x128xf32>
    %21 = arith.addf %18, %20 : vector<24x128xf32>
    %cst_10 = arith.constant 0.000000e+00 : f32
    %22 = vector.broadcast %cst_10 : f32 to vector<24x128xf32>
    %23 = arith.cmpf ogt, %21, %22 : vector<24x128xf32>
    %cst_11 = arith.constant 0.000000e+00 : f32
    %24 = vector.broadcast %cst_11 : f32 to vector<24x128xf32>
    %25 = arith.minimumf %21, %24 : vector<24x128xf32>
    %26 = math.exp %25 : vector<24x128xf32>
    %cst_12 = arith.constant 1.000000e+00 : f32
    %27 = vector.broadcast %cst_12 : f32 to vector<24x128xf32>
    %28 = arith.subf %26, %27 : vector<24x128xf32>
    %29 = arith.select %23, %21, %28 : vector<24x128xi1>, vector<24x128xf32>
    %c0_13 = arith.constant 0 : index
    %c0_14 = arith.constant 0 : index
    %30 = vector.load %arg6[%c0_13, %c0_14] : memref<128x128xf32, #tpu.memory_space<vmem>>, vector<128x128xf32>
    %cst_15 = arith.constant dense<0.000000e+00> : vector<24x128xf32>
    %31 = tpu.matmul %29, %30, %cst_15 {dimension_numbers = #tpu.dot_dimension_numbers<[1], [0], [0], [1], [0, 0, 1, 1], [], []>} : vector<24x128xf32>, vector<128x128xf32>, vector<24x128xf32> -> vector<24x128xf32>
    %c0_16 = arith.constant 0 : index
    %c0_17 = arith.constant 0 : index
    %32 = vector.load %arg7[%c0_16, %c0_17] : memref<1x128xf32, #tpu.memory_space<vmem>>, vector<1x128xf32>
    %33 = vector.broadcast %32 : vector<1x128xf32> to vector<24x128xf32>
    %34 = arith.addf %31, %33 : vector<24x128xf32>
    %cst_18 = arith.constant 0.000000e+00 : f32
    %35 = vector.broadcast %cst_18 : f32 to vector<24x128xf32>
    %36 = arith.cmpf ogt, %34, %35 : vector<24x128xf32>
    %cst_19 = arith.constant 0.000000e+00 : f32
    %37 = vector.broadcast %cst_19 : f32 to vector<24x128xf32>
    %38 = arith.minimumf %34, %37 : vector<24x128xf32>
    %39 = math.exp %38 : vector<24x128xf32>
    %cst_20 = arith.constant 1.000000e+00 : f32
    %40 = vector.broadcast %cst_20 : f32 to vector<24x128xf32>
    %41 = arith.subf %39, %40 : vector<24x128xf32>
    %42 = arith.select %36, %34, %41 : vector<24x128xi1>, vector<24x128xf32>
    %c0_21 = arith.constant 0 : index
    %c0_22 = arith.constant 0 : index
    %43 = vector.load %arg9[%c0_21, %c0_22] : memref<24x128xf32, #tpu.memory_space<vmem>>, vector<24x128xf32>
    tpu.vector_store %arg9[%c0_21, %c0_22], %42 {strides = array<i32>} : memref<24x128xf32, #tpu.memory_space<vmem>>, vector<24x128xf32>,
    %c24_i32 = arith.constant 24 : i32
    %44 = arith.muli %arg0, %c24_i32 : i32
    %c24_i32_23 = arith.constant 24 : i32
    %45 = arith.subi %c24_i32_23, %44 : i32
    %c24_i32_24 = arith.constant 24 : i32
    %46 = arith.minsi %45, %c24_i32_24 : i32
    %c0_i32_25 = arith.constant 0 : i32
    %c0_i32_26 = arith.constant 0 : i32
    %47 = arith.subi %46, %c0_i32_26 : i32
    %48 = arith.addi %c0_i32_26, %47 : i32
    %c1_i32 = arith.constant 1 : i32
    scf.for %arg10 = %c0_i32_26 to %48 step %c1_i32  : i32 {
      %52 = arith.addi %44, %arg10 : i32
      %53 = arith.index_cast %52 : i32 to index
      %54 = memref.load %arg1[%53] : memref<24xi32, #tpu.memory_space<smem>>
      %55 = arith.index_cast %arg10 : i32 to index
      %c0_29 = arith.constant 0 : index
      %56 = vector.load %arg9[%55, %c0_29] : memref<24x128xf32, #tpu.memory_space<vmem>>, vector<1x128xf32>
      %57 = arith.index_cast %54 : i32 to index
      %c0_30 = arith.constant 0 : index
      %58 = vector.load %arg8[%57, %c0_30] : memref<8x128xf32, #tpu.memory_space<vmem>>, vector<1x128xf32>
      %59 = arith.maximumf %58, %56 : vector<1x128xf32>
      %60 = arith.index_cast %54 : i32 to index
      %c0_31 = arith.constant 0 : index
      %61 = vector.load %arg8[%60, %c0_31] : memref<8x128xf32, #tpu.memory_space<vmem>>, vector<1x128xf32>
      tpu.vector_store %arg8[%60, %c0_31], %59 {strides = array<i32>} : memref<8x128xf32, #tpu.memory_space<vmem>>, vector<1x128xf32>,
    }
    %c0_i32_27 = arith.constant 0 : i32
    %49 = arith.cmpi eq, %arg0, %c0_i32_27 : i32
    %50 = arith.extui %49 : i1 to i32
    %c0_i32_28 = arith.constant 0 : i32
    %51 = arith.cmpi ne, %50, %c0_i32_28 : i32
    scf.if %51 {
      %c0_29 = arith.constant 0 : index
      %c0_30 = arith.constant 0 : index
      %52 = vector.load %arg8[%c0_29, %c0_30] : memref<8x128xf32, #tpu.memory_space<vmem>>, vector<8x128xf32>
      %cst_31 = arith.constant -5.000000e+29 : f32
      %53 = vector.broadcast %cst_31 : f32 to vector<8x128xf32>
      %54 = arith.cmpf ogt, %52, %53 : vector<8x128xf32>
      %cst_32 = arith.constant 0.000000e+00 : f32
      %55 = vector.broadcast %cst_32 : f32 to vector<8x128xf32>
      %56 = arith.select %54, %52, %55 : vector<8x128xi1>, vector<8x128xf32>
      %c0_33 = arith.constant 0 : index
      %c0_34 = arith.constant 0 : index
      %57 = vector.load %arg8[%c0_33, %c0_34] : memref<8x128xf32, #tpu.memory_space<vmem>>, vector<8x128xf32>
      tpu.vector_store %arg8[%c0_33, %c0_34], %56 {strides = array<i32>} : memref<8x128xf32, #tpu.memory_space<vmem>>, vector<8x128xf32>,
    } else {
    }
    return
  }
  func.func @transform_0(%arg0: i32, %arg1: memref<24xi32, #tpu.memory_space<smem>>) -> (i32, i32) {
    %c0_i32 = arith.constant 0 : i32
    %c0_i32_0 = arith.constant 0 : i32
    return %arg0, %c0_i32 : i32, i32
  }
  func.func @transform_1(%arg0: i32, %arg1: memref<24xi32, #tpu.memory_space<smem>>) -> (i32, i32) {
    %c0_i32 = arith.constant 0 : i32
    %c0_i32_0 = arith.constant 0 : i32
    %c0_i32_1 = arith.constant 0 : i32
    return %c0_i32, %c0_i32_0 : i32, i32
  }
  func.func @transform_2(%arg0: i32, %arg1: memref<24xi32, #tpu.memory_space<smem>>) -> (i32, i32) {
    %c0_i32 = arith.constant 0 : i32
    %c0_i32_0 = arith.constant 0 : i32
    %c0_i32_1 = arith.constant 0 : i32
    return %c0_i32, %c0_i32_0 : i32, i32
  }
  func.func @transform_3(%arg0: i32, %arg1: memref<24xi32, #tpu.memory_space<smem>>) -> (i32, i32) {
    %c0_i32 = arith.constant 0 : i32
    %c0_i32_0 = arith.constant 0 : i32
    %c0_i32_1 = arith.constant 0 : i32
    return %c0_i32, %c0_i32_0 : i32, i32
  }
  func.func @transform_4(%arg0: i32, %arg1: memref<24xi32, #tpu.memory_space<smem>>) -> (i32, i32) {
    %c0_i32 = arith.constant 0 : i32
    %c0_i32_0 = arith.constant 0 : i32
    %c0_i32_1 = arith.constant 0 : i32
    return %c0_i32, %c0_i32_0 : i32, i32
  }
  func.func @transform_5(%arg0: i32, %arg1: memref<24xi32, #tpu.memory_space<smem>>) -> (i32, i32) {
    %c0_i32 = arith.constant 0 : i32
    %c0_i32_0 = arith.constant 0 : i32
    %c0_i32_1 = arith.constant 0 : i32
    return %c0_i32, %c0_i32_0 : i32, i32
  }
  func.func @transform_6(%arg0: i32, %arg1: memref<24xi32, #tpu.memory_space<smem>>) -> (i32, i32) {
    %c0_i32 = arith.constant 0 : i32
    %c0_i32_0 = arith.constant 0 : i32
    %c0_i32_1 = arith.constant 0 : i32
    return %c0_i32, %c0_i32_0 : i32, i32
  }
}

</mosaic_0001>

<bundles_post_ra>
// kernel: tpu_custom_call.1
= control target key start
LH: loop header
LB: loop body
LE: loop exit
PB: predicated region body
PF: predicated region fallthrough
CT: control target
= control target key end

     0   :  { %s874_s0 = inlined_call_operand.vmem [shape: s32[24], index: 0, kind: input, shape index: {}]   ;;  %s875_s1 = inlined_call_operand.vmem [shape: s32[24,2], index: 1, kind: input, shape index: {}]   ;;  %s876_s2 = inlined_call_operand.vmem [shape: f32[8,128], index: 2, kind: input, shape index: {}]   ;;  %s877_s3 = inlined_call_operand.vmem [shape: f32[8,128], index: 3, kind: input, shape index: {}]   ;;  %s878_s4 = inlined_call_operand.vmem [shape: f32[1,128], index: 4, kind: input, shape index: {}]   ;;  %s879_s5 = inlined_call_operand.hbm [shape: f32[128,128], index: 5, kind: input, shape index: {}]   ;;  %s880_s6 = inlined_call_operand.vmem [shape: f32[1,128], index: 6, kind: input, shape index: {}]   ;;  %s881_s7 = inlined_call_operand.hbm [shape: f32[8,128], index: 7, kind: output, shape index: {}]  }
   0x1   :  { %s12_s26 = sshll.u32 %s874_s0, 4  ;;  %s13_s26 = int_to_ptr.vmem [resolvable:$true] %s12_s26 }
   0x2   :  { %s657_s27 = scalar_lea.vmem %s13_s26, 16  ;;  %p662_p1 = scmp.lt.s32.totalorder %s13_s26, %s13_s26 }
   0x3   :  { %p658_p0 = scmp.ne.s32.totalorder %s13_s26, %s657_s27  ;;  %p663_p2 = scmp.lt.s32.totalorder %s657_s27, %s657_s27 }
   0x5   :  { %p664_p3 = por %p663_p2, %p662_p1 }
   0x7   :  { %p665_p4 = pnand %p664_p3, %p658_p0 }
   0x9   :  { %668 = shalt.err (!%p665_p4)  }
   0xa   :  { %s727_s28 = smov [#allocation4]  }
   0xb   :  { %15 = dma.vmem_to_smem %s13_s26, 16, %s727_s28, [#allocation3] }
   0xc   :  { %717 = dma.done.wait [#allocation3], 16 }
   0xd   :  { %718 = vsyncadd [#allocation3], 4294967280 }
   0xe   :  { %17 = sfence }
   0xf   :  { %18 = vsyncpa [#allocation6], 0 }
  0x10   :  { %19 = vsyncpa [#allocation7], 0  ;;  %s728_s29 = smov [#allocation5]   ;;  %s669_s9 = scalar_lea.hbm %s879_s5, 2048 }
  0x11   :  { %s33_s30 = sshll.u32 %s728_s29, 4  ;;  %p670_p5 = scmp.ne.s32.totalorder %s879_s5, %s669_s9  ;;  %s34_s30 = int_to_ptr.vmem [resolvable:$true] %s33_s30 }
  0x12   :  { %p673_p6 = scmp.lt.u32.totalorder %s669_s9, %s879_s5 }
  0x14   :  { %p675_p7 = pnand %p673_p6, %p670_p5 }
  0x16   :  { %678 = shalt.err (!%p675_p7)
}
  0x17   :  { %s679_s14 = scalar_lea.vmem %s34_s30, 2048  ;;  %p684_p9 = scmp.lt.s32.totalorder %s34_s30, %s34_s30 }
  0x18   :  { %p680_p8 = scmp.ne.s32.totalorder %s34_s30, %s679_s14  ;;  %p685_p10 = scmp.lt.s32.totalorder %s679_s14, %s679_s14 }
  0x1a   :  { %p686_p11 = por %p685_p10, %p684_p9 }
  0x1c   :  { %p687_p12 = pnand %p686_p11, %p680_p8 }
  0x1e   :  { %690 = shalt.err (!%p687_p12)
}
  0x1f   :  { %s729_s15 = smov 128   ;;  %s730_s16 = smov 8  }
  0x20   :  { %39 = dma.hbm_to_vmem [thread:$0]  %s879_s5, 2048, %s34_s30, [#allocation6], %s729_s15, %s729_s15, %s730_s16  }
  0x21   :  { %719 = dma.done.wait [#allocation6], 2048  }
  0x22   :  { %720 = vsyncadd [#allocation6], 4294965248  ;;  %v731_v0 = vmov -1e+30   ;;  %v732_v1 = vmov 1   ;;  %v733_v2 = vmov 0.0   ;;  %v53_v10 = vlaneseq }
  0x23   :  { %49 = vst [vmem:[#allocation8] sm:$0xff] %v731_v0  ;;  %640 = vset.pattern.permute.xlu0 %v732_v1  ;;  %642 = vset.pattern.permute.xlu1 %v732_v1  ;;  %v50_v3 = vld [vmem:[%s875_s1] sm:$0xff]  ;;  %v51_v4 = vld [vmem:[%s875_s1 + $0x8] sm:$0xff]  ;;  %vm734_vm0 = vmmov 0   ;;  %v735_v6 = vmov 0   ;;  %v52_v8 = vld [vmem:[%s875_s1 + $0x10] sm:$0xff] }
  0x24   :  { %529 = vmatprep.subr.mxu1 %v733_v2  ;;  %518 = vmatprep.subr.mxu0 %v733_v2  ;;  %v91_v5 = vld [vmem:[%s876_s2] sm:$0xff]  ;;  %v736_v9 = vmov 0.0|0.0   ;;  %v54_v11 = vand.u32 127, %v53_v10  ;;  %v300_v12 = vld [vmem:[#allocation5] sm:$0xff]  ;;  %vm93_vm1 = vcmask 64512   ;;  %v302_v27 = vld [vmem:[#allocation5 + $0x10] sm:$0xff] }
  0x25   :  { %56 = vperm.xlu0 %640, %v50_v3   ;;  %59 = vperm.xlu1 %642, %v51_v4   ;;  %v92_v7 = vld [vmem:[%s877_s3] sm:$0xff]  ;;  %v303_v28 = vld [vmem:[#allocation5 + $0x18] sm:$0xff]  ;;  %v304_v30 = vld [vmem:[#allocation5 + $0x20] sm:$0xff] }
  0x26   :  { %530 = vmatpush3.msra.mxu1 %v91_v5  ;;  %531 = vmatprep.mubr.msk.f32.mxu1 %vm734_vm0, %v733_v2  ;;  %v301_v13 = vld [vmem:[#allocation5 + $0x8] sm:$0xff]  ;;  %v585_v29 = vpack.c.bf16 %v303_v28, %v302_v27  ;;  %v306_v33 = vld [vmem:[#allocation5 + $0x30] sm:$0xff]  ;;  %v307_v34 = vld [vmem:[#allocation5 + $0x38] sm:$0xff] }
  0x27   :  { %520 = vmatprep.mubr.msk.f32.mxu0 %vm734_vm0, %v733_v2  ;;  %519 = vmatpush3.msra.mxu0 %v92_v7  ;;  %v582_v17 = vpack.c.bf16 %v301_v13, %v300_v12  ;;  %v305_v31 = vld [vmem:[#allocation5 + $0x28] sm:$0xff]  ;;  %v591_v35 = vpack.c.bf16 %v307_v34, %v306_v33  ;;  %v308_v36 = vld [vmem:[#allocation5 + $0x40] sm:$0xff]  ;;  %v310_v39 = vld [vmem:[#allocation5 + $0x50] sm:$0xff] }
  0x28   :  { %581 = vmatprep.subr.bf16.mxu0 %v736_v9  ;;  %605 = vmatprep.subr.bf16.mxu1 %v736_v9  ;;  %v588_v32 = vpack.c.bf16 %v305_v31, %v304_v30  ;;  %v309_v37 = vld [vmem:[#allocation5 + $0x48] sm:$0xff]  ;;  %v311_v40 = vld [vmem:[#allocation5 + $0x58] sm:$0xff]  ;;  %v312_v42 = vld [vmem:[#allocation5 + $0x60] sm:$0xff] }
  0x29   :  { %641 = vset.pattern.permute.xlu0 %v735_v6  ;;  %643 = vset.pattern.permute.xlu1 %v735_v6  ;;  %v594_v38 = vpack.c.bf16 %v309_v37, %v308_v36  ;;  %v597_v41 = vpack.c.bf16 %v311_v40, %v310_v39  ;;  %v313_v43 = vld [vmem:[#allocation5 + $0x68] sm:$0xff]  ;;  %v314_v45 = vld [vmem:[#allocation5 + $0x70] sm:$0xff]  ;;  %v315_v46 = vld [vmem:[#allocation5 + $0x78] sm:$0xff] }
  0x2a   :  { %74 = vperm.xlu0 %641, %v50_v3   ;;  %77 = vperm.xlu1 %643, %v51_v4   ;;  %v600_v44 = vpack.c.bf16 %v313_v43, %v312_v42  ;;  %v603_v47 = vpack.c.bf16 %v315_v46, %v314_v45  ;;  %v483_v52 = vld [vmem:[%s878_s4] ss:$0 sm:$0xff] }
  0x2e   :  { %80 = vperm.xlu0 %641, %v52_v8   ;;  %644 = vset.pattern.permute.xlu1 %v732_v1 }
  0x2f   :  { %62 = vperm.xlu1 %644, %v52_v8  }
  0xa4   :  { %v57_v14 = vpop.permute.xlu0 %56  ;;  %v60_v15 = vpop.permute.xlu1 %59 }
  0xa5   :  { %vm64_vm2 = vcmp.eq.s32.totalorder %v54_v11, %v57_v14  ;;  %vm65_vm3 = vcmp.eq.s32.totalorder %v54_v11, %v60_v15 }
  0xa6   :  { %v471_v16 = vsel %vm64_vm2, 1.0, %v733_v2  ;;  %v472_v18 = vsel %vm65_vm3, 1.0, %v733_v2 }
  0xa7   :  { %532 = vmatmul.mubr.msk.f32.vlgmr.msra.gmra.mrb[0].mxu1 %vm93_vm1, %v471_v16 }
  0xa8   :  { %534 = vmatprep.mubr.msk.f32.mxu1 %vm734_vm0, %v733_v2  ;;  %613 = vmatpush3.bf16.msra.mxu1 %v582_v17 }
  0xa9   :  { %v75_v19 = vpop.permute.xlu0 %74  ;;  %v78_v20 = vpop.permute.xlu1 %77  ;;  %606 = vmatprep.subr.bf16.mxu1 %v736_v9 }
  0xaa   :  { %vm82_vm4 = vcmp.eq.s32.totalorder %v54_v11, %v75_v19  ;;  %vm83_vm5 = vcmp.eq.s32.totalorder %v54_v11, %v78_v20  ;;  %v487_v19 = vld [vmem:[%s880_s6] ss:$0 sm:$0xff]  ;;  %s723_s6 = smov 0  }
  0xab   :  { %v474_v21 = vsel %vm82_vm4, 1.0, %v733_v2  ;;  %535 = vmatmul.mubr.msk.f32.gmra.mrb[2].mxu1 %vm93_vm1, %v472_v18  ;;  %v475_v22 = vsel %vm83_vm5, 1.0, %v733_v2 }
  0xac   :  { %521 = vmatmul.mubr.msk.f32.vlgmr.msra.gmra.mrb[0].mxu0 %vm93_vm1, %v474_v21  ;;  %537 = vmatprep.mubr.msk.f32.mxu1 %vm734_vm0, %v733_v2 }
  0xad   :  { %v81_v23 = vpop.permute.xlu0 %80  ;;  %523 = vmatprep.mubr.msk.f32.mxu0 %vm734_vm0, %v733_v2  ;;  %583 = vmatpush3.bf16.msra.mxu0 %v582_v17 }
  0xae   :  { %v63_v24 = vpop.permute.xlu1 %62  ;;  %584 = vmatprep.subr.bf16.mxu0 %v736_v9  ;;  %vm84_vm7 = vcmp.eq.s32.totalorder %v54_v11, %v81_v23  ;;  %614 = vmatpush3.bf16.msra.mxu1 %v585_v29 }
  0xaf   :  { %vm66_vm6 = vcmp.eq.s32.totalorder %v54_v11, %v63_v24  ;;  %v476_v26 = vsel %vm84_vm7, 1.0, %v733_v2  ;;  %607 = vmatprep.subr.bf16.mxu1 %v736_v9 }
  0xb0   :  { %v473_v25 = vsel %vm66_vm6, 1.0, %v733_v2  ;;  %524 = vmatmul.mubr.msk.f32.gmra.mrb[2].mxu0 %vm93_vm1, %v475_v22 }
  0xb1   :  { %526 = vmatprep.mubr.msk.f32.mxu0 %vm734_vm0, %v733_v2  ;;  %538 = vmatmul.mubr.msk.f32.gmra.mrb[4].mxu1 %vm93_vm1, %v473_v25 }
  0xb2   :  { %575 = vmatprep.mubr.msk.f32.mxu1 %vm734_vm0, %v733_v2  ;;  %586 = vmatpush3.bf16.msra.mxu0 %v585_v29 }
  0xb3   :  { %587 = vmatprep.subr.bf16.mxu0 %v736_v9  ;;  %615 = vmatpush3.bf16.msra.mxu1 %v588_v32 }
  0xb4   :  { %527 = vmatmul.mubr.msk.f32.gmra.mrb[4].mxu0 %vm93_vm1, %v476_v26  ;;  %608 = vmatprep.subr.bf16.mxu1 %v736_v9 }
  0xb5   :  { %572 = vmatprep.mubr.msk.f32.mxu0 %vm734_vm0, %v733_v2 }
  0xb6   :  { %589 = vmatpush3.bf16.msra.mxu0 %v588_v32 }
  0xb7   :  { %590 = vmatprep.subr.bf16.mxu0 %v736_v9  ;;  %616 = vmatpush3.bf16.msra.mxu1 %v591_v35 }
  0xb8   :  { %609 = vmatprep.subr.bf16.mxu1 %v736_v9 }
  0xba   :  { %592 = vmatpush3.bf16.msra.mxu0 %v591_v35 }
  0xbb   :  { %593 = vmatprep.subr.bf16.mxu0 %v736_v9  ;;  %617 = vmatpush3.bf16.msra.mxu1 %v594_v38 }
  0xbc   :  { %610 = vmatprep.subr.bf16.mxu1 %v736_v9 }
  0xbe   :  { %595 = vmatpush3.bf16.msra.mxu0 %v594_v38 }
  0xbf   :  { %596 = vmatprep.subr.bf16.mxu0 %v736_v9  ;;  %618 = vmatpush3.bf16.msra.mxu1 %v597_v41 }
  0xc0   :  { %611 = vmatprep.subr.bf16.mxu1 %v736_v9 }
  0xc2   :  { %598 = vmatpush3.bf16.msra.mxu0 %v597_v41 }
  0xc3   :  { %599 = vmatprep.subr.bf16.mxu0 %v736_v9  ;;  %619 = vmatpush3.bf16.msra.mxu1 %v600_v44 }
  0xc4   :  { %612 = vmatprep.subr.bf16.mxu1 %v736_v9 }
  0xc6   :  { %601 = vmatpush3.bf16.msra.mxu0 %v600_v44 }
  0xc7   :  { %602 = vmatprep.subr.bf16.mxu0 %v736_v9  ;;  %620 = vmatpush3.bf16.msra.mxu1 %v603_v47 }
  0xca   :  { %604 = vmatpush3.bf16.msra.mxu0 %v603_v47 }
 0x17a   :  { %v258_v48 = vpop.f32.mrb[0].mxu1 }
 0x17b   :  { %v533_v49 = vpop.f32.mrb[1].mxu1 }
 0x17e   :  { %v263_v50 = vpop.f32.mrb[2].mxu1 }
 0x17f   :  { %v169_v51 = vpop.f32.mrb[0].mxu0  ;;  %v536_v53 = vpop.f32.mrb[3].mxu1 }
 0x180   :  { %v259_v54 = vadd.f32 %v258_v48, %v169_v51  ;;  %v522_v55 = vpop.f32.mrb[1].mxu0 }
 0x182   :  { %v279_v56 = vadd.f32 %v483_v52, %v259_v54 }
 0x183   :  { %v174_v57 = vpop.f32.mrb[2].mxu0 }
 0x184   :  { %v285_v58 = vmin.f32 %v279_v56, 0.0  ;;  %v264_v59 = vadd.f32 %v263_v50, %v174_v57  ;;  %v525_v60 = vpop.f32.mrb[3].mxu0  ;;  %v268_v61 = vpop.f32.mrb[4].mxu1  ;;  %vm282_vm8 = vcmp.gt.f32.partialorder %v279_v56, 0.0 }
 0x185   :  { %v539_v62 = vpop.f32.mrb[5].mxu1 }
 0x186   :  { %v288_v63 = vmul.f32 1.442695, %v285_v58  ;;  %v280_v0 = vadd.f32 %v483_v52, %v264_v59 }
 0x187   :  { %v179_v1 = vpop.f32.mrb[4].mxu0 }
 0x188   :  { %645 = vpow2.f32 %v288_v63  ;;  %v286_v3 = vmin.f32 %v280_v0, 0.0  ;;  %v269_v4 = vadd.f32 %v268_v61, %v179_v1  ;;  %v528_v5 = vpop.f32.mrb[5].mxu0  ;;  %vm283_vm9 = vcmp.gt.f32.partialorder %v280_v0, 0.0 }
 0x18a   :  { %v290_v6 = vmul.f32 1.442695, %v286_v3  ;;  %v281_v7 = vadd.f32 %v483_v52, %v269_v4 }
 0x18c   :  { %647 = vpow2.f32 %v290_v6  ;;  %v287_v8 = vmin.f32 %v281_v7, 0.0  ;;  %vm284_vm10 = vcmp.gt.f32.partialorder %v281_v7, 0.0 }
 0x18e   :  { %v292_v9 = vmul.f32 1.442695, %v287_v8 }
 0x190   :  { %649 = vpow2.f32 %v292_v9 }
 0x192   :  { %v646_v10 = vpop.eup %645 }
 0x193   :  { %v484_v11 = vadd.f32 -1.0, %v646_v10 }
 0x195   :  { %v297_v12 = vsel %vm282_vm8, %v279_v56, %v484_v11 }
 0x196   :  { %v648_v13 = vpop.eup %647  ;;  %573 = vmatmul.mubr.f32.vlgmr.msra.gmra.mrb[6].mxu0 %v297_v12 }
 0x197   :  { %v485_v14 = vadd.f32 -1.0, %v648_v13 }
 0x199   :  { %v298_v15 = vsel %vm283_vm9, %v280_v0, %v485_v14 }
 0x19a   :  { %v650_v16 = vpop.eup %649  ;;  %576 = vmatmul.mubr.f32.vlgmr.msra.gmra.mrb[6].mxu1 %v298_v15 }
 0x19b   :  { %578 = vmatprep.mubr.msk.f32.mxu1 %vm734_vm0, %v733_v2  ;;  %v486_v17 = vadd.f32 -1.0, %v650_v16 }
 0x19d   :  { %v299_v18 = vsel %vm284_vm10, %v281_v7, %v486_v17 }
 0x19e   :  { %579 = vmatmul.mubr.f32.gmra.mrb[8].mxu1 %v299_v18 }
 0x269   :  { %v389_v20 = vpop.f32.mrb[6].mxu0 }
 0x26a   :  { %v390_v21 = vadd.f32 %v487_v19, %v389_v20  ;;  %v574_v22 = vpop.f32.mrb[7].mxu0 }
 0x26c   :  { %v406_v23 = vmin.f32 %v390_v21, 0.0  ;;  %vm403_vm11 = vcmp.gt.f32.partialorder %v390_v21, 0.0 }
 0x26d   :  { %v394_v24 = vpop.f32.mrb[6].mxu1 }
 0x26e   :  { %v409_v25 = vmul.f32 1.442695, %v406_v23  ;;  %v395_v26 = vadd.f32 %v487_v19, %v394_v24  ;;  %v577_v27 = vpop.f32.mrb[7].mxu1 }
 0x270   :  { %651 = vpow2.f32 %v409_v25  ;;  %v407_v28 = vmin.f32 %v395_v26, 0.0  ;;  %vm404_vm12 = vcmp.gt.f32.partialorder %v395_v26, 0.0 }
 0x271   :  { %v399_v29 = vpop.f32.mrb[8].mxu1 }
 0x272   :  { %v411_v2 = vmul.f32 1.442695, %v407_v28  ;;  %v400_v30 = vadd.f32 %v487_v19, %v399_v29  ;;  %v580_v31 = vpop.f32.mrb[9].mxu1 }
 0x274   :  { %653 = vpow2.f32 %v411_v2  ;;  %v408_v32 = vmin.f32 %v400_v30, 0.0  ;;  %vm405_vm13 = vcmp.gt.f32.partialorder %v400_v30, 0.0 }
 0x276   :  { %v413_v33 = vmul.f32 1.442695, %v408_v32 }
 0x278   :  { %655 = vpow2.f32 %v413_v33 }
 0x27a   :  { %v652_v34 = vpop.eup %651 }
 0x27b   :  { %v488_v35 = vadd.f32 -1.0, %v652_v34 }
 0x27d   :  { %v418_v36 = vsel %vm403_vm11, %v390_v21, %v488_v35 }
 0x27e   :  { %v654_v37 = vpop.eup %653  ;;  %421 = vst [vmem:[#allocation2] sm:$0xff] %v418_v36 }
 0x27f   :  { %v489_v38 = vadd.f32 -1.0, %v654_v37 }
 0x281   :  { %v419_v39 = vsel %vm404_vm12, %v395_v26, %v489_v38 }
 0x282   :  { %v656_v40 = vpop.eup %655  ;;  %422 = vst [vmem:[#allocation2 + $0x8] sm:$0xff] %v419_v39 }
 0x283   :  { %v490_v41 = vadd.f32 -1.0, %v656_v40 }
 0x285   :  { %v420_v42 = vsel %vm405_vm13, %v400_v30, %v490_v41 }
 0x286   :  { %423 = vst [vmem:[#allocation2 + $0x10] sm:$0xff] %v420_v42 }
 0x287 LB: > { %s435_s28 = sld [smem:[#allocation4 + %s725_s6]]  ;;  %s436_s29 = scalar_lea.vmem [#allocation2], %s725_s6  ;;  %s725_s6 = sphi %s723_s6, %s431_s6  }
 0x288   : > { %s431_s6 = sadd.s32 1, %s725_s6  }
 0x289   : > { %p430_p13 = scmp.ge.s32.totalorder %s431_s6, 24 }
 0x28a   :  { %s737_s8 = smov (%p430_p13), [#allocation8]  }
 0x28b   :  { %433 = sbr.rel (!%p430_p13) target bundleno = 647 (0x287), region = 65  ;;  %s455_s0 = sshll.u32 (%p430_p13), %s737_s8, 4  ;;  %s456_s0 = int_to_ptr.vmem [resolvable:$true] %s455_s0 }
 0x28c   :  { %s691_s9 = scalar_lea.vmem (%p430_p13), %s456_s0, 128  ;;  %p696_p1 = scmp.lt.s32.totalorder (%p430_p13), %s456_s0, %s456_s0 }
 0x28d   : > { %v437_v43 = vld [vmem:[%s436_s29] sm:$0x1]  ;;  %s438_s30 = scalar_lea.vmem [#allocation8], %s435_s28  ;;  %p692_p0 = scmp.ne.s32.totalorder (%p430_p13), %s456_s0, %s691_s9 }
 0x28e   : > { %v439_v44 = vld [vmem:[%s438_s30] sm:$0x1]  ;;  %p697_p2 = scmp.lt.s32.totalorder (%p430_p13), %s691_s9, %s691_s9 }
 0x28f   : > { %v440_v45 = vmax.f32 %v439_v44, %v437_v43 }
 0x290   :  { %p698_p3 = por (%p430_p13), %p697_p2, %p696_p1 }
 0x291   : > { %441 = vst [vmem:[%s438_s30] sm:$0x1] %v440_v45 }
 0x292   :  { %p699_p4 = pnand %p698_p3, %p692_p0 }
 0x298   :  { %v445_v46 = vld [vmem:[#allocation8] sm:$0xff] }
 0x299   :  { %vm446_vm14 = vcmp.gt.f32.partialorder %v445_v46, -5e+29 }
 0x29a   :  { %v447_v47 = vsel %vm446_vm14, %v445_v46, 0.0 }
 0x29b   :  { %448 = vst [vmem:[#allocation8] sm:$0xff] %v447_v47 }
 0x29c   :  { %702 = shalt.err (!%p699_p4)
}
 0x29d   :  { %s703_s12 = scalar_lea.hbm %s881_s7, 128 }
 0x29e   :  { %p704_p5 = scmp.ne.s32.totalorder %s881_s7, %s703_s12  ;;  %p707_p6 = scmp.lt.u32.totalorder %s703_s12, %s881_s7 }
 0x2a0   :  { %p709_p7 = pnand %p707_p6, %p704_p5 }
 0x2a2   :  { %712 = shalt.err (!%p709_p7)
}
 0x2a3   :  { %458 = dma.vmem_to_hbm [thread:$0]  %s456_s0, 128, %s881_s7, [#allocation7]  }
 0x2a4   :  { %721 = dma.done.wait [#allocation7], 128  }
 0x2a5   :  { %722 = vsyncadd [#allocation7], 4294967168 }
 0x2a6   :  { %462 = vsyncpa [#allocation6], 1 }
 0x2a7   :  { %463 = vsyncpa [#allocation7], 1 }

</bundles_post_ra>
